<compile_context>
chip_gen: v6e
topology: v6e:2x2x1
jax: 0.10.0
libtpu: 0.0.40
codegen_flags: <defaults>
</compile_context>

<pallas_src>
import jax
import jax.numpy as jnp
import numpy as np
from jax import lax
from jax.experimental import pallas as pl
from jax.experimental.pallas import tpu as pltpu

EPS_NORM_SQ = 1e-16   # per-factor norm floor of 1e-8 (F.cosine_similarity eps), squared
EPS_SIM = 1e-6


def _pick_speaker_tile(N, M, D, budget_bytes=24 * 1024 * 1024):
    """Largest speaker tile (divisor of N; multiple of 8 or == N so blocked
    second-to-last dims stay legal) whose f32 working set fits the per-tile
    VMEM budget.  Budget is sized against v7x (64 MiB physical, 32 MiB scoped
    default) with headroom for double-buffering."""
    def tile_bytes(t):
        # emb tile (x2 double-buffered) + utt_cent + emb_n  +  ~3 (t,M,N) slabs
        # (cos_diff / sim / exp)  +  resident unit-norm centroids.
        return 4 * (4 * t * M * D + 3 * t * M * N + N * D)

    cands = [t for t in range(N, 0, -1) if N % t == 0 and (t == N or t % 8 == 0)]
    for t in cands:
        if tile_bytes(t) <= budget_bytes:
            return t
    # TODO(synk): for huge N with no fitting divisor, pad N up to a multiple of
    # 8 and mask the padded speakers instead of falling back to this tile.
    return cands[-1]


def _centroid_kernel(emb_ref, cent_ref):
    """Unit-norm speaker centroids for one speaker tile."""
    emb = emb_ref[...]                                             # (Nt, M, D) f32
    c = jnp.sum(emb, axis=1) * (1.0 / emb.shape[1])                # (Nt, D)
    inv_c = lax.rsqrt(jnp.maximum(jnp.sum(c * c, axis=-1, keepdims=True), EPS_NORM_SQ))
    cent_ref[...] = c * inv_c


def _make_loss_kernel(N, M, D, n_tile, mxu_dtype):
    inv_m1 = 1.0 / (M - 1)

    def kernel(w_ref, b_ref, emb_ref, cent_ref, loss_ref):
        emb = emb_ref[...]                 # (Nt, M, D) f32 -- this speaker tile
        cent_n = cent_ref[...]             # (N, D) f32 -- all unit-norm centroids
        w = w_ref[0, 0]
        b = b_ref[0, 0]

        # Leave-one-out ("utterance") centroids via sublane reduce + broadcast.
        sum_c = jnp.sum(emb, axis=1, keepdims=True)                # (Nt, 1, D)
        utt_cent = (sum_c - emb) * inv_m1                          # (Nt, M, D)

        # Inverse norms on the EUP (rsqrt), no f32 divides on the VALU.
        inv_e = lax.rsqrt(jnp.maximum(
            jnp.sum(emb * emb, axis=-1, keepdims=True), EPS_NORM_SQ))          # (Nt, M, 1)
        inv_u = lax.rsqrt(jnp.maximum(
            jnp.sum(utt_cent * utt_cent, axis=-1, keepdims=True), EPS_NORM_SQ))  # (Nt, M, 1)

        # cos(emb[n,m], leave-one-out centroid[n,m]) -- kept in f32 on the VPU/XLU.
        cos_same = jnp.sum(emb * utt_cent, axis=-1, keepdims=True) * inv_e * inv_u  # (Nt, M, 1)

        # cos_diff: one MXU contraction over D on pre-normalized operands.
        # The rhs "transpose" is expressed through the contraction dims (no .T);
        # bf16 operands by default (MXU-native on v5e/v6e/v7x), f32 accumulate.
        # TODO(synk): drop the 2-D reshape once Mosaic's dot_general supports a
        # rank-3 lhs with two free dims and no batch dim.
        emb_n = (emb * inv_e).reshape(n_tile * M, D).astype(mxu_dtype)  # (Nt*M, D)
        cen = cent_n.astype(mxu_dtype)                                  # (N, D)
        dots = lax.dot_general(emb_n, cen,
                               dimension_numbers=(((1,), (1,)), ((), ())),
                               preferred_element_type=jnp.float32)      # (Nt*M, N)
        cos_diff = dots.reshape(n_tile, M, N)

        # Same-speaker mask from two iota compares -- no HBM mask input.
        tile_start = pl.program_id(0) * n_tile
        row = lax.broadcasted_iota(jnp.int32, (n_tile, M, N), 0) + tile_start
        col = lax.broadcasted_iota(jnp.int32, (n_tile, M, N), 2)
        same = row == col

        # NOTE: torch.clamp(self.w, 1e-6) in the reference is out-of-place and
        # its result is discarded, so w is used as-is.
        cossim = jnp.where(same, cos_same, cos_diff) + EPS_SIM        # (Nt, M, N)
        sim = w * cossim + b

        # pos is exactly the (unique) same-speaker entry of each row.
        pos = w * (cos_same + EPS_SIM) + b                            # (Nt, M, 1)
        # Faithful to the reference: log(sum(exp(sim)) + 1e-6), no max-subtract.
        neg = jnp.log(jnp.sum(jnp.exp(sim), axis=-1, keepdims=True) + EPS_SIM)  # (Nt, M, 1)

        loss_ref[...] = (neg - pos).reshape(n_tile, M)                # per-embedding loss

    return kernel


def ge2e_loss(embeddings, w=10.0, b=-5.0, mxu_dtype=jnp.bfloat16):
    """GE2E loss. embeddings: (N, M, D) float32. Returns scalar loss."""
    N, M, D = embeddings.shape
    assert M > 1, "GE2E requires at least 2 utterances per speaker"
    emb = embeddings.astype(jnp.float32)
    n_tile = _pick_speaker_tile(N, M, D)
    grid = (N // n_tile,)

    w_arr = jnp.full((1, 1), w, dtype=jnp.float32)
    b_arr = jnp.full((1, 1), b, dtype=jnp.float32)

    # 48 MiB scoped VMEM: above the 24 MiB per-tile budget + double-buffering,
    # below v7x's 64 MiB physical (v5e/v6e have 128 MiB, so safe everywhere).
    cparams = pltpu.CompilerParams(
        dimension_semantics=("parallel",),
        vmem_limit_bytes=48 * 1024 * 1024)

    # Pass 1: unit-norm speaker centroids (tiny (N, D) result, resident in pass 2).
    cent_n = pl.pallas_call(
        _centroid_kernel,
        out_shape=jax.ShapeDtypeStruct((N, D), jnp.float32),
        grid=grid,
        in_specs=[pl.BlockSpec((n_tile, M, D), lambda i: (i, 0, 0))],
        out_specs=pl.BlockSpec((n_tile, D), lambda i: (i, 0)),
        compiler_params=cparams,
    )(emb)

    # Pass 2: per-embedding losses, speaker-tiled "parallel" grid.
    per_emb = pl.pallas_call(
        _make_loss_kernel(N, M, D, n_tile, mxu_dtype),
        out_shape=jax.ShapeDtypeStruct((N, M), jnp.float32),
        grid=grid,
        in_specs=[
            pl.BlockSpec(memory_space=pltpu.MemorySpace.SMEM),      # w
            pl.BlockSpec(memory_space=pltpu.MemorySpace.SMEM),      # b
            pl.BlockSpec((n_tile, M, D), lambda i: (i, 0, 0)),      # emb tile
            pl.BlockSpec((N, D), lambda i: (0, 0)),                 # all centroids
        ],
        out_specs=pl.BlockSpec((n_tile, M), lambda i: (i, 0)),
        compiler_params=cparams,
    )(w_arr, b_arr, emb, cent_n)

    return jnp.sum(per_emb)


def ge2e_loss_ref(embeddings, w=10.0, b=-5.0):
    """Pure-JAX reference mirroring the PyTorch module."""
    N, M, D = embeddings.shape
    eps = 1e-8
    centroids = embeddings.mean(axis=1)                               # (N, D)
    sum_c = embeddings.sum(axis=1, keepdims=True)                     # (N, 1, D)
    utt_cent = (sum_c - embeddings) / (M - 1)                         # (N, M, D)

    def cos(a, b_):
        num = jnp.sum(a * b_, axis=-1)
        den = jnp.maximum(jnp.linalg.norm(a, axis=-1) * jnp.linalg.norm(b_, axis=-1), eps)
        return num / den

    cos_same = cos(embeddings, utt_cent)                              # (N, M)
    cos_diff = cos(embeddings[:, :, None, :], centroids[None, None, :, :])  # (N, M, N)
    j = jnp.arange(N)[:, None, None]
    k = jnp.arange(N)[None, None, :]
    mask = j == k
    cossim = jnp.where(mask, cos_same[:, :, None], cos_diff) + 1e-6
    sim = w * cossim + b
    pos = jnp.sum(jnp.where(mask, sim, 0.0), axis=2)
    neg = jnp.log(jnp.exp(sim).sum(axis=2) + 1e-6)
    return jnp.sum(neg - pos)


if __name__ == "__main__":
    key = jax.random.PRNGKey(0)
    N, M, D = 4, 8, 32  # speakers, utterances per speaker, embedding dim
    embeddings = jax.random.normal(key, (N, M, D), dtype=jnp.float32)

    ref = ge2e_loss_ref(embeddings, w=10.0, b=-5.0)

    # Default path: bf16 MXU operands (MXU-native), f32 accumulation.
    loss_bf16 = jax.block_until_ready(ge2e_loss(embeddings, w=10.0, b=-5.0))
    np.testing.assert_allclose(np.asarray(loss_bf16), np.asarray(ref), rtol=2e-2, atol=2e-2)

    # f32 MXU operands as a tighter cross-check of the kernel math.
    loss_f32 = jax.block_until_ready(
        ge2e_loss(embeddings, w=10.0, b=-5.0, mxu_dtype=jnp.float32))
    np.testing.assert_allclose(np.asarray(loss_f32), np.asarray(ref), rtol=5e-3, atol=5e-2)

    print("KERNEL_OK")
</pallas_src>

<mosaic_0001>
module attributes {stable_mosaic.version = 11 : i64} {
  func.func @_centroid_kernel(%arg0: i32, %arg1: memref<4x8x32xf32, #tpu.memory_space<vmem>>, %arg2: memref<4x32xf32, #tpu.memory_space<vmem>>) attributes {dimension_semantics = [#tpu.dimension_semantics<parallel>], iteration_bounds = array<i64: 1>, scalar_prefetch = 0 : i64, scratch_operands = 0 : i64, tpu.core_type = #tpu.core_type<tc>, window_params = [{transform_indices = @transform_0, window_bounds = array<i64: 4, 8, 32>}, {transform_indices = @transform_1, window_bounds = array<i64: 4, 32>}]} {
    %c0 = arith.constant 0 : index
    %c0_0 = arith.constant 0 : index
    %c0_1 = arith.constant 0 : index
    %0 = vector.load %arg1[%c0, %c0_0, %c0_1] : memref<4x8x32xf32, #tpu.memory_space<vmem>>, vector<4x8x32xf32>
    %cst = arith.constant dense<0.000000e+00> : vector<4x32xf32>
    %1 = vector.multi_reduction <add>, %0, %cst [1] : vector<4x8x32xf32> to vector<4x32xf32>
    %cst_2 = arith.constant 1.250000e-01 : f32
    %2 = vector.broadcast %cst_2 : f32 to vector<4x32xf32>
    %3 = arith.mulf %1, %2 : vector<4x32xf32>
    %4 = arith.mulf %3, %3 : vector<4x32xf32>
    %cst_3 = arith.constant dense<0.000000e+00> : vector<4xf32>
    %5 = vector.multi_reduction <add>, %4, %cst_3 [1] : vector<4x32xf32> to vector<4xf32>
    %6 = vector.shape_cast %5 : vector<4xf32> to vector<4x1xf32>
    %cst_4 = arith.constant 1.000000e-16 : f32
    %7 = vector.broadcast %cst_4 : f32 to vector<4x1xf32>
    %8 = arith.maximumf %6, %7 : vector<4x1xf32>
    %9 = math.rsqrt %8 : vector<4x1xf32>
    %10 = vector.broadcast %9 : vector<4x1xf32> to vector<4x32xf32>
    %11 = arith.mulf %3, %10 : vector<4x32xf32>
    %c0_5 = arith.constant 0 : index
    %c0_6 = arith.constant 0 : index
    %12 = vector.load %arg2[%c0_5, %c0_6] : memref<4x32xf32, #tpu.memory_space<vmem>>, vector<4x32xf32>
    tpu.vector_store %arg2[%c0_5, %c0_6], %11 {strides = array<i32>} : memref<4x32xf32, #tpu.memory_space<vmem>>, vector<4x32xf32>,
    return
  }
  func.func @transform_0(%arg0: i32) -> (i32, i32, i32) {
    %c0_i32 = arith.constant 0 : i32
    %c0_i32_0 = arith.constant 0 : i32
    %c0_i32_1 = arith.constant 0 : i32
    return %arg0, %c0_i32, %c0_i32_0 : i32, i32, i32
  }
  func.func @transform_1(%arg0: i32) -> (i32, i32) {
    %c0_i32 = arith.constant 0 : i32
    %c0_i32_0 = arith.constant 0 : i32
    return %arg0, %c0_i32 : i32, i32
  }
}

</mosaic_0001>

<bundles_post_ra>
// kernel: tpu_custom_call.1
= control target key start
LH: loop header
LB: loop body
LE: loop exit
PB: predicated region body
PF: predicated region fallthrough
CT: control target
= control target key end

     0   :  { %6 = vsyncpa [#allocation3], 0  ;;  %s198_s0 = inlined_call_operand.hbm [shape: f32[4,8,32], index: 0, kind: input, shape index: {}]   ;;  %s199_s1 = inlined_call_operand.hbm [shape: f32[4,32], index: 1, kind: output, shape index: {}]  }
   0x1   :  { %7 = vsyncpa [#allocation4], 0  ;;  %s170_s6 = smov [#allocation2]  }
   0x2   :  { %s13_s7 = sshll.u32 %s170_s6, 4  ;;  %s14_s7 = int_to_ptr.vmem [resolvable:$true] %s13_s7 }
   0x3   :  { %s134_s8 = scalar_lea.vmem %s14_s7, 512  ;;  %p139_p1 = scmp.lt.s32.totalorder %s14_s7, %s14_s7 }
   0x4   :  { %p135_p0 = scmp.ne.s32.totalorder %s14_s7, %s134_s8  ;;  %p140_p2 = scmp.lt.s32.totalorder %s134_s8, %s134_s8 }
   0x6   :  { %p141_p3 = por %p140_p2, %p139_p1 }
   0x8   :  { %p142_p4 = pnand %p141_p3, %p135_p0 }
   0xa   :  { %145 = shalt.err (!%p142_p4)
}
   0xb   :  { %s171_s9 = smov 128   ;;  %s172_s10 = smov 8  }
   0xc   :  { %19 = dma.hbm_to_vmem [thread:$0]  %s198_s0, 512, %s14_s7, [#allocation3], %s171_s9, %s171_s9, %s172_s10  }
   0xd   :  { %166 = dma.done.wait [#allocation3], 512  }
   0xe   :  { %167 = vsyncadd [#allocation3], 4294966784  ;;  %vm27_vm0 = vcmask 261120   ;;  %v23_v0 = vld [vmem:[#allocation2] sm:$0xff]  ;;  %v24_v1 = vld [vmem:[#allocation2 + $0x8] sm:$0xff]  ;;  %vm68_vm1 = vcmask 1041409  }
   0xf   :  { %v25_v2 = vld [vmem:[#allocation2 + $0x10] sm:$0xff]  ;;  %v26_v3 = vld [vmem:[#allocation2 + $0x18] sm:$0xff]  ;;  %v28_v4 = vsel %vm27_vm0, %v23_v0, 0.0  ;;  %v35_v5 = vsel %vm27_vm0, %v24_v1, 0.0  ;;  %vm70_vm2 = vcmask 1042434   ;;  %vm72_vm3 = vcmask 1043459  }
  0x10   :  { %v42_v6 = vsel %vm27_vm0, %v25_v2, 0.0  ;;  %v29_v7 = vrot.slane %v28_v4, 4  ;;  %v36_v8 = vrot.slane %v35_v5, 4  ;;  %v49_v10 = vsel %vm27_vm0, %v26_v3, 0.0  ;;  %s173_s0 = smov [#allocation5]  }
  0x11   :  { %v43_v9 = vrot.slane %v42_v6, 4  ;;  %v50_v11 = vrot.slane %v49_v10, 4  ;;  %vm75_vm4 = vcmask 257024   ;;  %s111_s13 = sshll.u32 %s173_s0, 4  ;;  %s112_s13 = int_to_ptr.vmem [resolvable:$true] %s111_s13 }
  0x12   :  { %v30_v12 = vadd.f32 %v29_v7, %v28_v4  ;;  %v37_v13 = vadd.f32 %v36_v8, %v35_v5  ;;  %s146_s14 = scalar_lea.vmem %s112_s13, 64  ;;  %p151_p6 = scmp.lt.s32.totalorder %s112_s13, %s112_s13 }
  0x13   :  { %v44_v14 = vadd.f32 %v43_v9, %v42_v6  ;;  %v51_v15 = vadd.f32 %v50_v11, %v49_v10  ;;  %p147_p5 = scmp.ne.s32.totalorder %s112_s13, %s146_s14  ;;  %p152_p7 = scmp.lt.s32.totalorder %s146_s14, %s146_s14 }
  0x14   :  { %v31_v16 = vrot.slane %v30_v12, 2  ;;  %v38_v17 = vrot.slane %v37_v13, 2 }
  0x15   :  { %v45_v18 = vrot.slane %v44_v14, 2  ;;  %v52_v19 = vrot.slane %v51_v15, 2  ;;  %p153_p8 = por %p152_p7, %p151_p6 }
  0x16   :  { %v32_v20 = vadd.f32 %v31_v16, %v30_v12  ;;  %v39_v21 = vadd.f32 %v38_v17, %v37_v13 }
  0x17   :  { %v46_v22 = vadd.f32 %v45_v18, %v44_v14  ;;  %v53_v23 = vadd.f32 %v52_v19, %v51_v15  ;;  %p154_p9 = pnand %p153_p8, %p147_p5 }
  0x18   :  { %v33_v24 = vrot.slane %v32_v20, 1  ;;  %v40_v25 = vrot.slane %v39_v21, 1 }
  0x19   :  { %v47_v26 = vrot.slane %v46_v22, 1  ;;  %v54_v27 = vrot.slane %v53_v23, 1 }
  0x1a   :  { %v34_v28 = vadd.f32 %v33_v24, %v32_v20  ;;  %v41_v29 = vadd.f32 %v40_v25, %v39_v21 }
  0x1b   :  { %v48_v30 = vadd.f32 %v47_v26, %v46_v22  ;;  %v55_v31 = vadd.f32 %v54_v27, %v53_v23 }
  0x1c   :  { %v56_v32 = vmul.f32 0.125, %v34_v28  ;;  %v57_v33 = vmul.f32 0.125, %v41_v29 }
  0x1d   :  { %v58_v34 = vmul.f32 0.125, %v48_v30  ;;  %v59_v35 = vmul.f32 0.125, %v55_v31 }
  0x1e   :  { %v60_v36 = vmul.f32 %v56_v32, %v56_v32  ;;  %v61_v37 = vmul.f32 %v57_v33, %v57_v33 }
  0x1f   :  { %v62_v38 = vmul.f32 %v58_v34, %v58_v34  ;;  %v63_v39 = vmul.f32 %v59_v35, %v59_v35 }
  0x20   :  { %v69_v40 = vsel %vm68_vm1, %v61_v37, %v60_v36 }
  0x21   :  { %v71_v41 = vsel %vm70_vm2, %v62_v38, %v69_v40 }
  0x22   :  { %v73_v42 = vsel %vm72_vm3, %v63_v39, %v71_v41 }
  0x23   :  { %v76_v43 = vsel %vm75_vm4, %v73_v42, 0.0 }
  0x24   :  { %77 = vadd.xlane.f32.xlu0 %v76_v43 }
  0xad   :  { %v78_v44 = vpop.xlane.xlu0 %77 }
  0xae   :  { %v79_v45 = vmax.f32 %v78_v44, 1e-16 }
  0xb0   :  { %124 = vrsqrt.f32 %v79_v45 }
  0xbd   :  { %v125_v46 = vpop.eup %124 }
  0xbe   :  { %v82_v47 = vrot.slane %v125_v46, 1  ;;  %v83_v48 = vrot.slane %v125_v46, 2  ;;  %v84_v49 = vrot.slane %v125_v46, 3  ;;  %v89_v53 = vmul.f32 %v125_v46, %v56_v32 }
  0xc0   :  { %v90_v50 = vmul.f32 %v82_v47, %v57_v33  ;;  %v91_v51 = vmul.f32 %v83_v48, %v58_v34  ;;  %v92_v52 = vmul.f32 %v84_v49, %v59_v35 }
  0xc2   :  { %v97_v54 = vrot.slane %v90_v50, 7  ;;  %v99_v55 = vrot.slane %v91_v51, 6  ;;  %v101_v57 = vrot.slane %v92_v52, 5 }
  0xc4   :  { %v98_v56 = vsel %vm68_vm1, %v97_v54, %v89_v53 }
  0xc5   :  { %v100_v58 = vsel %vm70_vm2, %v99_v55, %v98_v56 }
  0xc6   :  { %v102_v59 = vsel %vm72_vm3, %v101_v57, %v100_v58 }
  0xc7   :  { %104 = vst.msk [vmem:[#allocation5] sm:$0xf] %vm75_vm4, %v102_v59 }
  0xc8   :  { %157 = shalt.err (!%p154_p9)
}
  0xc9   :  { %114 = dma.vmem_to_hbm [thread:$0]  %s112_s13, 64, %s199_s1, [#allocation4]  }
  0xca   :  { %168 = dma.done.wait [#allocation4], 64  }
  0xcb   :  { %169 = vsyncadd [#allocation4], 4294967232 }
  0xcc   :  { %118 = vsyncpa [#allocation3], 1 }
  0xcd   :  { %119 = vsyncpa [#allocation4], 1 }

</bundles_post_ra>
